<compile_context>
chip_gen: v6e
topology: v6e:2x2x1
jax: 0.10.0
libtpu: 0.0.40
codegen_flags: <defaults>
</compile_context>

<pallas_src>
import functools

import jax
import jax.numpy as jnp
import numpy as np
from jax.experimental import pallas as pl
from jax.experimental.pallas import tpu as pltpu


# ----------------------------- kernel helpers ------------------------------

def _embedding_head(x, keep, w1_ref, b1_ref, w2_ref, b2_ref):
    """Linear -> ReLU -> (Dropout=id) -> Linear -> mask -> L2 normalize."""
    f32 = jnp.float32
    h = jnp.dot(x, w1_ref[...], preferred_element_type=f32) + b1_ref[...].astype(f32)
    h = jnp.maximum(h, 0.0)
    # TODO(synk): nn.Dropout treated as identity (deterministic / eval semantics).
    e = jnp.dot(h.astype(w2_ref.dtype), w2_ref[...],
                preferred_element_type=f32) + b2_ref[...].astype(f32)
    e = e * keep                                  # zero masked tokens before normalize
    # F.normalize(p=2, dim=-1, eps=1e-12)  ==  x * rsqrt(max(sum(x^2), 1e-24))
    ss = jnp.sum(e * e, axis=-1, keepdims=True)
    return e * jax.lax.rsqrt(jnp.maximum(ss, 1e-24))


# ----------------------------- Pallas kernels ------------------------------

def _query_encode_kernel(x_ref, keep_ref, w1_ref, b1_ref, w2_ref, b2_ref, out_ref):
    e = _embedding_head(x_ref[...], keep_ref[...], w1_ref, b1_ref, w2_ref, b2_ref)
    out_ref[...] = e.astype(out_ref.dtype)


def _doc_score_kernel(q_ref, qsel_ref, xl_ref, xk_ref, keep_ref,
                      w1_ref, b1_ref, w2_ref, b2_ref,
                      k1w_ref, k1b_ref, g_ref, beta_ref, k2w_ref, k3w_ref,
                      out_ref, *, ld, training, kw_threshold):
    f32 = jnp.float32
    keep = keep_ref[...]                                   # (rows, 1) punctuation mask

    # ---- embedding_head + normalize on the doc hidden states ----
    e = _embedding_head(xl_ref[...], keep, w1_ref, b1_ref, w2_ref, b2_ref)

    # ---- kw_detection MLP on hidden_states[args.weight_mask] ----
    xk = xk_ref[...]
    hk = jnp.dot(xk, k1w_ref[...], preferred_element_type=f32) + k1b_ref[...].astype(f32)
    hk = jnp.maximum(hk, 0.0)
    mu = jnp.mean(hk, axis=-1, keepdims=True)                     # LayerNorm eps=1e-5
    var = jnp.mean(hk * hk, axis=-1, keepdims=True) - mu * mu     # one-pass variance
    hk = (hk - mu) * jax.lax.rsqrt(var + 1e-5) * g_ref[...].astype(f32) \
        + beta_ref[...].astype(f32)
    # TODO(synk): nn.Dropout treated as identity (deterministic / eval semantics).
    hk = jnp.maximum(jnp.dot(hk.astype(k2w_ref.dtype), k2w_ref[...],
                             preferred_element_type=f32), 0.0)
    logit = jnp.sum(hk * k3w_ref[...].astype(f32), axis=-1, keepdims=True)   # EH -> 1
    w = jax.nn.sigmoid(logit)
    if not training:                      # evaluate_score(): threshold keyword weights
        w = jnp.where(w < kw_threshold, 0.0, w)
    w = w * keep                          # weight_mask * punctuation_mask

    # ---- MaxSim score against ALL query embeddings (VMEM resident) ----
    q = q_ref[...]                                         # (Nq, E)
    dw = (e * w).astype(q.dtype)                           # (rows, E) weighted doc embs
    s = jax.lax.dot_general(q, dw, (((1,), (1,)), ((), ())),
                            preferred_element_type=f32)    # (Nq, rows) one MXU matmul
    # NOTE: the explicit doc-position score mask of score_cart is omitted because
    # masked doc rows already have exactly-zero weighted embeddings -> scores are 0.
    rows = dw.shape[0]
    db = rows // ld
    cols = [jnp.max(s[:, j * ld:(j + 1) * ld], axis=-1, keepdims=True)
            for j in range(db)]                            # max over each doc's Ld cols
    mx = cols[0] if db == 1 else jnp.concatenate(cols, axis=-1)   # (Nq, db)
    # per-query sum / |query_mask| as one tiny matmul with the precomputed selector.
    out_ref[...] = jnp.dot(qsel_ref[...], mx, preferred_element_type=f32
                           ).astype(out_ref.dtype)


# ----------------------------- wrapper --------------------------------------

def _const_spec(arr):
    nd = arr.ndim
    return pl.BlockSpec(arr.shape, lambda *_: (0,) * nd)   # constant -> VMEM resident


def _query_row_tile(nq, target=1024):
    if nq <= target or nq % 8:
        return nq
    t = min(nq, target) - (min(nq, target) % 8)
    while t >= 8:
        if nq % t == 0:
            return t
        t -= 8
    return nq


def _doc_batch_tile(bd, ld, target_rows=1024):
    if bd * ld <= target_rows:
        return bd
    for t in range(bd - 1, 0, -1):
        if bd % t == 0 and (t * ld) % 8 == 0 and t * ld <= target_rows:
            return t
    return bd


def colbert_kw_forward(params, q_hidden, q_attn_mask, d_hidden_last, d_hidden_kw,
                       d_input_ids, mask_buffer, *, training=True, kw_threshold=0.5,
                       compute_dtype=jnp.float32):
    """ColBERTwKWMask.forward with args.query_pad_token=None, args.weight_mask=int."""
    f32 = jnp.float32
    cd = jnp.dtype(compute_dtype)
    bq, lq, h = q_hidden.shape
    bd, ld, _ = d_hidden_last.shape
    e_dim = params["w2"].shape[1]
    nq, nd = bq * lq, bd * ld

    p = dict(params)
    if cd != f32:
        # bf16 MXU operands (activations + matmul weights); accumulation stays f32 and
        # biases / LayerNorm params / masks stay f32.  Halves activation HBM bytes.
        q_hidden = q_hidden.astype(cd)
        d_hidden_last = d_hidden_last.astype(cd)
        d_hidden_kw = d_hidden_kw.astype(cd)
        for k in ("w1", "w2", "k1w", "k2w"):
            p[k] = p[k].astype(cd)

    # ----- masks / per-query selector (cheap XLA elementwise, computed once) -----
    qmask = q_attn_mask.astype(f32).reshape(nq, 1)
    punct = jnp.logical_not(
        jnp.any(d_input_ids[..., None] == mask_buffer[None, None, :], axis=-1))
    pmask = punct.astype(f32).reshape(nd, 1)
    qsum = jnp.sum(q_attn_mask.astype(f32), axis=1, keepdims=True)          # (Bq, 1)
    owner = (jnp.arange(nq, dtype=jnp.int32)[None, :] // lq
             ) == jnp.arange(bq, dtype=jnp.int32)[:, None]
    qsel = owner.astype(f32) / qsum                                          # (Bq, Nq)

    cp = pltpu.CompilerParams(dimension_semantics=("parallel",),
                              vmem_limit_bytes=32 * 1024 * 1024)

    # ----- kernel A: query embedding_head + mask + L2 normalize -----
    tq = _query_row_tile(nq)
    q_emb = pl.pallas_call(
        _query_encode_kernel,
        out_shape=jax.ShapeDtypeStruct((nq, e_dim), cd),
        grid=(nq // tq,),
        in_specs=[pl.BlockSpec((tq, h), lambda i: (i, 0)),
                  pl.BlockSpec((tq, 1), lambda i: (i, 0)),
                  _const_spec(p["w1"]), _const_spec(p["b1"]),
                  _const_spec(p["w2"]), _const_spec(p["b2"])],
        out_specs=pl.BlockSpec((tq, e_dim), lambda i: (i, 0)),
        compiler_params=cp,
    )(q_hidden.reshape(nq, h), qmask, p["w1"], p["b1"], p["w2"], p["b2"])

    # ----- kernel B: doc encode + kw weighting + MaxSim score, fully fused -----
    db_tile = _doc_batch_tile(bd, ld)
    rows = db_tile * ld
    scores = pl.pallas_call(
        functools.partial(_doc_score_kernel, ld=ld, training=training,
                          kw_threshold=kw_threshold),
        out_shape=jax.ShapeDtypeStruct((bq, bd), f32),
        grid=(bd // db_tile,),
        in_specs=[_const_spec(q_emb), _const_spec(qsel),
                  pl.BlockSpec((rows, h), lambda j: (j, 0)),
                  pl.BlockSpec((rows, h), lambda j: (j, 0)),
                  pl.BlockSpec((rows, 1), lambda j: (j, 0)),
                  _const_spec(p["w1"]), _const_spec(p["b1"]),
                  _const_spec(p["w2"]), _const_spec(p["b2"]),
                  _const_spec(p["k1w"]), _const_spec(p["k1b"]),
                  _const_spec(p["ln_g"]), _const_spec(p["ln_b"]),
                  _const_spec(p["k2w"]), _const_spec(p["k3w"])],
        out_specs=pl.BlockSpec((bq, db_tile), lambda j: (0, j)),
        compiler_params=cp,
    )(q_emb, qsel, d_hidden_last.reshape(nd, h), d_hidden_kw.reshape(nd, h), pmask,
      p["w1"], p["b1"], p["w2"], p["b2"],
      p["k1w"], p["k1b"], p["ln_g"], p["ln_b"], p["k2w"], p["k3w"])
    return scores


# ----------------------------- pure-JAX reference ---------------------------

def _ref_head(params, x):
    h = jnp.maximum(x @ params["w1"] + params["b1"][0], 0.0)
    return h @ params["w2"] + params["b2"][0]


def _ref_kw_sigmoid(params, x):
    h = jnp.maximum(x @ params["k1w"] + params["k1b"][0], 0.0)
    mu = h.mean(-1, keepdims=True)
    var = ((h - mu) ** 2).mean(-1, keepdims=True)
    h = (h - mu) / jnp.sqrt(var + 1e-5) * params["ln_g"][0] + params["ln_b"][0]
    h = jnp.maximum(h @ params["k2w"], 0.0)
    return jax.nn.sigmoid(jnp.sum(h * params["k3w"][0], -1, keepdims=True))


def reference_forward(params, q_hidden, q_attn, d_last, d_kw, d_ids, buf, *,
                      training=True, kw_threshold=0.5):
    def l2n(x):
        n = jnp.sqrt(jnp.sum(x * x, -1, keepdims=True))
        return x / jnp.maximum(n, 1e-12)

    qmask = q_attn.astype(jnp.float32)[..., None]
    q = l2n(_ref_head(params, q_hidden) * qmask)
    punct = jnp.logical_not(jnp.any(d_ids[..., None] == buf[None, None, :], -1))
    pmask = punct.astype(jnp.float32)[..., None]
    d = l2n(_ref_head(params, d_last) * pmask)
    wmask = _ref_kw_sigmoid(params, d_kw) * pmask
    if not training:
        wmask = jnp.where(wmask < kw_threshold, 0.0, wmask)
    wd = d * wmask
    s = jnp.einsum("qih,djh->qidj", q, wd)
    s = s * pmask[..., 0][None, None, :, :]
    return s.max(-1).sum(1) / qmask.sum(1)


# ----------------------------- main ------------------------------------------

if __name__ == "__main__":
    key = jax.random.PRNGKey(0)
    ks = jax.random.split(key, 12)

    Bq, Lq, Bd, Ld = 2, 8, 2, 16
    H, EH, E = 32, 64, 32   # bert hidden, embedding_hidden_size, embedding_dim

    params = dict(
        # embedding_head: Linear(H->EH), ReLU, Dropout, Linear(EH->E)
        w1=jax.random.normal(ks[0], (H, EH), jnp.float32) * 0.05,
        b1=jax.random.normal(ks[1], (1, EH), jnp.float32) * 0.05,
        w2=jax.random.normal(ks[2], (EH, E), jnp.float32) * 0.05,
        b2=jax.random.normal(ks[3], (1, E), jnp.float32) * 0.05,
        # kw_detection: Linear(H->EH), ReLU, LayerNorm, Dropout,
        #               Linear(EH->EH, no bias), ReLU, Dropout, Linear(EH->1, no bias)
        k1w=jax.random.normal(ks[4], (H, EH), jnp.float32) * 0.05,
        k1b=jax.random.normal(ks[5], (1, EH), jnp.float32) * 0.05,
        ln_g=jnp.ones((1, EH), jnp.float32),
        ln_b=jnp.zeros((1, EH), jnp.float32),
        k2w=jax.random.normal(ks[6], (EH, EH), jnp.float32) * 0.05,
        # NOTE: the module inits kw_detection[-1].weight to zeros; a random value is
        # used here so the keyword-weighting path is numerically exercised.
        k3w=jax.random.normal(ks[11], (1, EH), jnp.float32) * 0.5,
    )

    # synthetic "BERT" hidden states (backbone itself is not re-implemented)
    q_hidden = jax.random.normal(ks[7], (Bq, Lq, H), jnp.float32)
    d_hidden_last = jax.random.normal(ks[8], (Bd, Ld, H), jnp.float32)
    d_hidden_kw = jax.random.normal(ks[9], (Bd, Ld, H), jnp.float32)

    q_attn = jnp.concatenate(
        [jnp.ones((Bq, Lq - 2), jnp.int32), jnp.zeros((Bq, 2), jnp.int32)], axis=1)
    d_input_ids = jax.random.randint(ks[10], (Bd, Ld), 0, 100, dtype=jnp.int32)
    # doc_mask_buffer: pad_token_id (0) + 32 synthetic punctuation token ids (1..32)
    mask_buffer = jnp.arange(0, 33, dtype=jnp.int32)

    args = (params, q_hidden, q_attn, d_hidden_last, d_hidden_kw,
            d_input_ids, mask_buffer)

    # --- training path (score_cart with raw keyword weights) ---
    ref_train = reference_forward(*args, training=True)

    out_f32 = jax.jit(functools.partial(colbert_kw_forward, training=True,
                                        compute_dtype=jnp.float32))(*args)
    out_f32 = jax.block_until_ready(out_f32)
    np.testing.assert_allclose(np.asarray(out_f32), np.asarray(ref_train),
                               rtol=2e-3, atol=2e-3)

    out_bf16 = jax.jit(functools.partial(colbert_kw_forward, training=True,
                                         compute_dtype=jnp.bfloat16))(*args)
    out_bf16 = jax.block_until_ready(out_bf16)
    np.testing.assert_allclose(np.asarray(out_bf16), np.asarray(ref_train),
                               rtol=2e-2, atol=2e-2)

    # --- eval path (evaluate_score: keyword weights thresholded) ---
    punct_np = ~np.any(np.asarray(d_input_ids)[..., None]
                       == np.asarray(mask_buffer)[None, None, :], axis=-1)
    wm = np.asarray(_ref_kw_sigmoid(params, d_hidden_kw))[..., 0] * punct_np
    vals = np.sort(wm[wm > 0])
    if vals.size >= 2:
        gi = int(np.argmax(vals[1:] - vals[:-1]))
        kw_thr = float(0.5 * (vals[gi] + vals[gi + 1]))  # far from every sigmoid value
    else:
        kw_thr = 0.5

    ref_eval = reference_forward(*args, training=False, kw_threshold=kw_thr)
    out_eval = jax.jit(functools.partial(colbert_kw_forward, training=False,
                                         kw_threshold=kw_thr,
                                         compute_dtype=jnp.float32))(*args)
    out_eval = jax.block_until_ready(out_eval)
    np.testing.assert_allclose(np.asarray(out_eval), np.asarray(ref_eval),
                               rtol=2e-3, atol=2e-3)

    print("KERNEL_OK")
</pallas_src>

<mosaic_0001>
module attributes {stable_mosaic.version = 11 : i64} {
  func.func @_query_encode_kernel(%arg0: i32, %arg1: memref<16x32xf32, #tpu.memory_space<vmem>>, %arg2: memref<16x1xf32, #tpu.memory_space<vmem>>, %arg3: memref<32x64xf32, #tpu.memory_space<vmem>>, %arg4: memref<1x64xf32, #tpu.memory_space<vmem>>, %arg5: memref<64x32xf32, #tpu.memory_space<vmem>>, %arg6: memref<1x32xf32, #tpu.memory_space<vmem>>, %arg7: memref<16x32xf32, #tpu.memory_space<vmem>>) attributes {dimension_semantics = [#tpu.dimension_semantics<parallel>], iteration_bounds = array<i64: 1>, scalar_prefetch = 0 : i64, scratch_operands = 0 : i64, tpu.core_type = #tpu.core_type<tc>, window_params = [{transform_indices = @transform_0, window_bounds = array<i64: 16, 32>}, {transform_indices = @transform_1, window_bounds = array<i64: 16, 1>}, {pipeline_mode = #tpu.pipeline_mode<synchronous>, transform_indices = @transform_2, window_bounds = array<i64: 32, 64>}, {pipeline_mode = #tpu.pipeline_mode<synchronous>, transform_indices = @transform_3, window_bounds = array<i64: 1, 64>}, {pipeline_mode = #tpu.pipeline_mode<synchronous>, transform_indices = @transform_4, window_bounds = array<i64: 64, 32>}, {pipeline_mode = #tpu.pipeline_mode<synchronous>, transform_indices = @transform_5, window_bounds = array<i64: 1, 32>}, {transform_indices = @transform_6, window_bounds = array<i64: 16, 32>}]} {
    %c0 = arith.constant 0 : index
    %c0_0 = arith.constant 0 : index
    %0 = vector.load %arg1[%c0, %c0_0] : memref<16x32xf32, #tpu.memory_space<vmem>>, vector<16x32xf32>
    %c0_1 = arith.constant 0 : index
    %c0_2 = arith.constant 0 : index
    %1 = vector.load %arg2[%c0_1, %c0_2] : memref<16x1xf32, #tpu.memory_space<vmem>>, vector<16x1xf32>
    %c0_3 = arith.constant 0 : index
    %c0_4 = arith.constant 0 : index
    %2 = vector.load %arg3[%c0_3, %c0_4] : memref<32x64xf32, #tpu.memory_space<vmem>>, vector<32x64xf32>
    %cst = arith.constant dense<0.000000e+00> : vector<16x64xf32>
    %3 = tpu.matmul %0, %2, %cst {dimension_numbers = #tpu.dot_dimension_numbers<[1], [0], [0], [1], [0, 0, 1, 1], [], []>} : vector<16x32xf32>, vector<32x64xf32>, vector<16x64xf32> -> vector<16x64xf32>
    %c0_5 = arith.constant 0 : index
    %c0_6 = arith.constant 0 : index
    %4 = vector.load %arg4[%c0_5, %c0_6] : memref<1x64xf32, #tpu.memory_space<vmem>>, vector<1x64xf32>
    %5 = vector.broadcast %4 : vector<1x64xf32> to vector<16x64xf32>
    %6 = arith.addf %3, %5 : vector<16x64xf32>
    %cst_7 = arith.constant 0.000000e+00 : f32
    %7 = vector.broadcast %cst_7 : f32 to vector<16x64xf32>
    %8 = arith.maximumf %6, %7 : vector<16x64xf32>
    %c0_8 = arith.constant 0 : index
    %c0_9 = arith.constant 0 : index
    %9 = vector.load %arg5[%c0_8, %c0_9] : memref<64x32xf32, #tpu.memory_space<vmem>>, vector<64x32xf32>
    %cst_10 = arith.constant dense<0.000000e+00> : vector<16x32xf32>
    %10 = tpu.matmul %8, %9, %cst_10 {dimension_numbers = #tpu.dot_dimension_numbers<[1], [0], [0], [1], [0, 0, 1, 1], [], []>} : vector<16x64xf32>, vector<64x32xf32>, vector<16x32xf32> -> vector<16x32xf32>
    %c0_11 = arith.constant 0 : index
    %c0_12 = arith.constant 0 : index
    %11 = vector.load %arg6[%c0_11, %c0_12] : memref<1x32xf32, #tpu.memory_space<vmem>>, vector<1x32xf32>
    %12 = vector.broadcast %11 : vector<1x32xf32> to vector<16x32xf32>
    %13 = arith.addf %10, %12 : vector<16x32xf32>
    %14 = vector.broadcast %1 : vector<16x1xf32> to vector<16x32xf32>
    %15 = arith.mulf %13, %14 : vector<16x32xf32>
    %16 = arith.mulf %15, %15 : vector<16x32xf32>
    %cst_13 = arith.constant dense<0.000000e+00> : vector<16xf32>
    %17 = vector.multi_reduction <add>, %16, %cst_13 [1] : vector<16x32xf32> to vector<16xf32>
    %18 = vector.shape_cast %17 : vector<16xf32> to vector<16x1xf32>
    %cst_14 = arith.constant 1.000000e-24 : f32
    %19 = vector.broadcast %cst_14 : f32 to vector<16x1xf32>
    %20 = arith.maximumf %18, %19 : vector<16x1xf32>
    %21 = math.rsqrt %20 : vector<16x1xf32>
    %22 = vector.broadcast %21 : vector<16x1xf32> to vector<16x32xf32>
    %23 = arith.mulf %15, %22 : vector<16x32xf32>
    %c0_15 = arith.constant 0 : index
    %c0_16 = arith.constant 0 : index
    %24 = vector.load %arg7[%c0_15, %c0_16] : memref<16x32xf32, #tpu.memory_space<vmem>>, vector<16x32xf32>
    tpu.vector_store %arg7[%c0_15, %c0_16], %23 {strides = array<i32>} : memref<16x32xf32, #tpu.memory_space<vmem>>, vector<16x32xf32>,
    return
  }
  func.func @transform_0(%arg0: i32) -> (i32, i32) {
    %c0_i32 = arith.constant 0 : i32
    %c0_i32_0 = arith.constant 0 : i32
    return %arg0, %c0_i32 : i32, i32
  }
  func.func @transform_1(%arg0: i32) -> (i32, i32) {
    %c0_i32 = arith.constant 0 : i32
    %c0_i32_0 = arith.constant 0 : i32
    return %arg0, %c0_i32 : i32, i32
  }
  func.func @transform_2(%arg0: i32) -> (i32, i32) {
    %c0_i32 = arith.constant 0 : i32
    %c0_i32_0 = arith.constant 0 : i32
    %c0_i32_1 = arith.constant 0 : i32
    return %c0_i32, %c0_i32_0 : i32, i32
  }
  func.func @transform_3(%arg0: i32) -> (i32, i32) {
    %c0_i32 = arith.constant 0 : i32
    %c0_i32_0 = arith.constant 0 : i32
    %c0_i32_1 = arith.constant 0 : i32
    return %c0_i32, %c0_i32_0 : i32, i32
  }
  func.func @transform_4(%arg0: i32) -> (i32, i32) {
    %c0_i32 = arith.constant 0 : i32
    %c0_i32_0 = arith.constant 0 : i32
    %c0_i32_1 = arith.constant 0 : i32
    return %c0_i32, %c0_i32_0 : i32, i32
  }
  func.func @transform_5(%arg0: i32) -> (i32, i32) {
    %c0_i32 = arith.constant 0 : i32
    %c0_i32_0 = arith.constant 0 : i32
    %c0_i32_1 = arith.constant 0 : i32
    return %c0_i32, %c0_i32_0 : i32, i32
  }
  func.func @transform_6(%arg0: i32) -> (i32, i32) {
    %c0_i32 = arith.constant 0 : i32
    %c0_i32_0 = arith.constant 0 : i32
    return %arg0, %c0_i32 : i32, i32
  }
}

module attributes {stable_mosaic.version = 11 : i64} {
  func.func @_doc_score_kernel(%arg0: i32, %arg1: memref<16x32xf32, #tpu.memory_space<vmem>>, %arg2: memref<2x16xf32, #tpu.memory_space<vmem>>, %arg3: memref<32x32xf32, #tpu.memory_space<vmem>>, %arg4: memref<32x32xf32, #tpu.memory_space<vmem>>, %arg5: memref<32x1xf32, #tpu.memory_space<vmem>>, %arg6: memref<32x64xf32, #tpu.memory_space<vmem>>, %arg7: memref<1x64xf32, #tpu.memory_space<vmem>>, %arg8: memref<64x32xf32, #tpu.memory_space<vmem>>, %arg9: memref<1x32xf32, #tpu.memory_space<vmem>>, %arg10: memref<32x64xf32, #tpu.memory_space<vmem>>, %arg11: memref<1x64xf32, #tpu.memory_space<vmem>>, %arg12: memref<1x64xf32, #tpu.memory_space<vmem>>, %arg13: memref<1x64xf32, #tpu.memory_space<vmem>>, %arg14: memref<64x64xf32, #tpu.memory_space<vmem>>, %arg15: memref<1x64xf32, #tpu.memory_space<vmem>>, %arg16: memref<2x2xf32, #tpu.memory_space<vmem>>) attributes {dimension_semantics = [#tpu.dimension_semantics<parallel>], iteration_bounds = array<i64: 1>, scalar_prefetch = 0 : i64, scratch_operands = 0 : i64, tpu.core_type = #tpu.core_type<tc>, window_params = [{pipeline_mode = #tpu.pipeline_mode<synchronous>, transform_indices = @transform_0, window_bounds = array<i64: 16, 32>}, {pipeline_mode = #tpu.pipeline_mode<synchronous>, transform_indices = @transform_1, window_bounds = array<i64: 2, 16>}, {transform_indices = @transform_2, window_bounds = array<i64: 32, 32>}, {transform_indices = @transform_3, window_bounds = array<i64: 32, 32>}, {transform_indices = @transform_4, window_bounds = array<i64: 32, 1>}, {pipeline_mode = #tpu.pipeline_mode<synchronous>, transform_indices = @transform_5, window_bounds = array<i64: 32, 64>}, {pipeline_mode = #tpu.pipeline_mode<synchronous>, transform_indices = @transform_6, window_bounds = array<i64: 1, 64>}, {pipeline_mode = #tpu.pipeline_mode<synchronous>, transform_indices = @transform_7, window_bounds = array<i64: 64, 32>}, {pipeline_mode = #tpu.pipeline_mode<synchronous>, transform_indices = @transform_8, window_bounds = array<i64: 1, 32>}, {pipeline_mode = #tpu.pipeline_mode<synchronous>, transform_indices = @transform_9, window_bounds = array<i64: 32, 64>}, {pipeline_mode = #tpu.pipeline_mode<synchronous>, transform_indices = @transform_10, window_bounds = array<i64: 1, 64>}, {pipeline_mode = #tpu.pipeline_mode<synchronous>, transform_indices = @transform_11, window_bounds = array<i64: 1, 64>}, {pipeline_mode = #tpu.pipeline_mode<synchronous>, transform_indices = @transform_12, window_bounds = array<i64: 1, 64>}, {pipeline_mode = #tpu.pipeline_mode<synchronous>, transform_indices = @transform_13, window_bounds = array<i64: 64, 64>}, {pipeline_mode = #tpu.pipeline_mode<synchronous>, transform_indices = @transform_14, window_bounds = array<i64: 1, 64>}, {transform_indices = @transform_15, window_bounds = array<i64: 2, 2>}]} {
    %c0 = arith.constant 0 : index
    %c0_0 = arith.constant 0 : index
    %0 = vector.load %arg5[%c0, %c0_0] : memref<32x1xf32, #tpu.memory_space<vmem>>, vector<32x1xf32>
    %c0_1 = arith.constant 0 : index
    %c0_2 = arith.constant 0 : index
    %1 = vector.load %arg3[%c0_1, %c0_2] : memref<32x32xf32, #tpu.memory_space<vmem>>, vector<32x32xf32>
    %c0_3 = arith.constant 0 : index
    %c0_4 = arith.constant 0 : index
    %2 = vector.load %arg6[%c0_3, %c0_4] : memref<32x64xf32, #tpu.memory_space<vmem>>, vector<32x64xf32>
    %cst = arith.constant dense<0.000000e+00> : vector<32x64xf32>
    %3 = tpu.matmul %1, %2, %cst {dimension_numbers = #tpu.dot_dimension_numbers<[1], [0], [0], [1], [0, 0, 1, 1], [], []>} : vector<32x32xf32>, vector<32x64xf32>, vector<32x64xf32> -> vector<32x64xf32>
    %c0_5 = arith.constant 0 : index
    %c0_6 = arith.constant 0 : index
    %4 = vector.load %arg7[%c0_5, %c0_6] : memref<1x64xf32, #tpu.memory_space<vmem>>, vector<1x64xf32>
    %5 = vector.broadcast %4 : vector<1x64xf32> to vector<32x64xf32>
    %6 = arith.addf %3, %5 : vector<32x64xf32>
    %cst_7 = arith.constant 0.000000e+00 : f32
    %7 = vector.broadcast %cst_7 : f32 to vector<32x64xf32>
    %8 = arith.maximumf %6, %7 : vector<32x64xf32>
    %c0_8 = arith.constant 0 : index
    %c0_9 = arith.constant 0 : index
    %9 = vector.load %arg8[%c0_8, %c0_9] : memref<64x32xf32, #tpu.memory_space<vmem>>, vector<64x32xf32>
    %cst_10 = arith.constant dense<0.000000e+00> : vector<32x32xf32>
    %10 = tpu.matmul %8, %9, %cst_10 {dimension_numbers = #tpu.dot_dimension_numbers<[1], [0], [0], [1], [0, 0, 1, 1], [], []>} : vector<32x64xf32>, vector<64x32xf32>, vector<32x32xf32> -> vector<32x32xf32>
    %c0_11 = arith.constant 0 : index
    %c0_12 = arith.constant 0 : index
    %11 = vector.load %arg9[%c0_11, %c0_12] : memref<1x32xf32, #tpu.memory_space<vmem>>, vector<1x32xf32>
    %12 = vector.broadcast %11 : vector<1x32xf32> to vector<32x32xf32>
    %13 = arith.addf %10, %12 : vector<32x32xf32>
    %14 = vector.broadcast %0 : vector<32x1xf32> to vector<32x32xf32>
    %15 = arith.mulf %13, %14 : vector<32x32xf32>
    %16 = arith.mulf %15, %15 : vector<32x32xf32>
    %cst_13 = arith.constant dense<0.000000e+00> : vector<32xf32>
    %17 = vector.multi_reduction <add>, %16, %cst_13 [1] : vector<32x32xf32> to vector<32xf32>
    %18 = vector.shape_cast %17 : vector<32xf32> to vector<32x1xf32>
    %cst_14 = arith.constant 1.000000e-24 : f32
    %19 = vector.broadcast %cst_14 : f32 to vector<32x1xf32>
    %20 = arith.maximumf %18, %19 : vector<32x1xf32>
    %21 = math.rsqrt %20 : vector<32x1xf32>
    %22 = vector.broadcast %21 : vector<32x1xf32> to vector<32x32xf32>
    %23 = arith.mulf %15, %22 : vector<32x32xf32>
    %c0_15 = arith.constant 0 : index
    %c0_16 = arith.constant 0 : index
    %24 = vector.load %arg4[%c0_15, %c0_16] : memref<32x32xf32, #tpu.memory_space<vmem>>, vector<32x32xf32>
    %c0_17 = arith.constant 0 : index
    %c0_18 = arith.constant 0 : index
    %25 = vector.load %arg10[%c0_17, %c0_18] : memref<32x64xf32, #tpu.memory_space<vmem>>, vector<32x64xf32>
    %cst_19 = arith.constant dense<0.000000e+00> : vector<32x64xf32>
    %26 = tpu.matmul %24, %25, %cst_19 {dimension_numbers = #tpu.dot_dimension_numbers<[1], [0], [0], [1], [0, 0, 1, 1], [], []>} : vector<32x32xf32>, vector<32x64xf32>, vector<32x64xf32> -> vector<32x64xf32>
    %c0_20 = arith.constant 0 : index
    %c0_21 = arith.constant 0 : index
    %27 = vector.load %arg11[%c0_20, %c0_21] : memref<1x64xf32, #tpu.memory_space<vmem>>, vector<1x64xf32>
    %28 = vector.broadcast %27 : vector<1x64xf32> to vector<32x64xf32>
    %29 = arith.addf %26, %28 : vector<32x64xf32>
    %cst_22 = arith.constant 0.000000e+00 : f32
    %30 = vector.broadcast %cst_22 : f32 to vector<32x64xf32>
    %31 = arith.maximumf %29, %30 : vector<32x64xf32>
    %cst_23 = arith.constant dense<0.000000e+00> : vector<32xf32>
    %32 = vector.multi_reduction <add>, %31, %cst_23 [1] : vector<32x64xf32> to vector<32xf32>
    %33 = vector.shape_cast %32 : vector<32xf32> to vector<32x1xf32>
    %cst_24 = arith.constant 6.400000e+01 : f32
    %34 = vector.broadcast %cst_24 : f32 to vector<32x1xf32>
    %35 = arith.divf %33, %34 : vector<32x1xf32>
    %36 = arith.mulf %31, %31 : vector<32x64xf32>
    %cst_25 = arith.constant dense<0.000000e+00> : vector<32xf32>
    %37 = vector.multi_reduction <add>, %36, %cst_25 [1] : vector<32x64xf32> to vector<32xf32>
    %38 = vector.shape_cast %37 : vector<32xf32> to vector<32x1xf32>
    %cst_26 = arith.constant 6.400000e+01 : f32
    %39 = vector.broadcast %cst_26 : f32 to vector<32x1xf32>
    %40 = arith.divf %38, %39 : vector<32x1xf32>
    %41 = arith.mulf %35, %35 : vector<32x1xf32>
    %42 = arith.subf %40, %41 : vector<32x1xf32>
    %43 = vector.broadcast %35 : vector<32x1xf32> to vector<32x64xf32>
    %44 = arith.subf %31, %43 : vector<32x64xf32>
    %cst_27 = arith.constant 9.99999974E-6 : f32
    %45 = vector.broadcast %cst_27 : f32 to vector<32x1xf32>
    %46 = arith.addf %42, %45 : vector<32x1xf32>
    %47 = math.rsqrt %46 : vector<32x1xf32>
    %48 = vector.broadcast %47 : vector<32x1xf32> to vector<32x64xf32>
    %49 = arith.mulf %44, %48 : vector<32x64xf32>
    %c0_28 = arith.constant 0 : index
    %c0_29 = arith.constant 0 : index
    %50 = vector.load %arg12[%c0_28, %c0_29] : memref<1x64xf32, #tpu.memory_space<vmem>>, vector<1x64xf32>
    %51 = vector.broadcast %50 : vector<1x64xf32> to vector<32x64xf32>
    %52 = arith.mulf %49, %51 : vector<32x64xf32>
    %c0_30 = arith.constant 0 : index
    %c0_31 = arith.constant 0 : index
    %53 = vector.load %arg13[%c0_30, %c0_31] : memref<1x64xf32, #tpu.memory_space<vmem>>, vector<1x64xf32>
    %54 = vector.broadcast %53 : vector<1x64xf32> to vector<32x64xf32>
    %55 = arith.addf %52, %54 : vector<32x64xf32>
    %c0_32 = arith.constant 0 : index
    %c0_33 = arith.constant 0 : index
    %56 = vector.load %arg14[%c0_32, %c0_33] : memref<64x64xf32, #tpu.memory_space<vmem>>, vector<64x64xf32>
    %cst_34 = arith.constant dense<0.000000e+00> : vector<32x64xf32>
    %57 = tpu.matmul %55, %56, %cst_34 {dimension_numbers = #tpu.dot_dimension_numbers<[1], [0], [0], [1], [0, 0, 1, 1], [], []>} : vector<32x64xf32>, vector<64x64xf32>, vector<32x64xf32> -> vector<32x64xf32>
    %cst_35 = arith.constant 0.000000e+00 : f32
    %58 = vector.broadcast %cst_35 : f32 to vector<32x64xf32>
    %59 = arith.maximumf %57, %58 : vector<32x64xf32>
    %c0_36 = arith.constant 0 : index
    %c0_37 = arith.constant 0 : index
    %60 = vector.load %arg15[%c0_36, %c0_37] : memref<1x64xf32, #tpu.memory_space<vmem>>, vector<1x64xf32>
    %61 = vector.broadcast %60 : vector<1x64xf32> to vector<32x64xf32>
    %62 = arith.mulf %59, %61 : vector<32x64xf32>
    %cst_38 = arith.constant dense<0.000000e+00> : vector<32xf32>
    %63 = vector.multi_reduction <add>, %62, %cst_38 [1] : vector<32x64xf32> to vector<32xf32>
    %64 = vector.shape_cast %63 : vector<32xf32> to vector<32x1xf32>
    %65 = arith.negf %64 : vector<32x1xf32>
    %66 = math.exp %65 : vector<32x1xf32>
    %cst_39 = arith.constant 1.000000e+00 : f32
    %67 = vector.broadcast %cst_39 : f32 to vector<32x1xf32>
    %68 = arith.addf %67, %66 : vector<32x1xf32>
    %69 = arith.divf %67, %68 : vector<32x1xf32>
    %70 = arith.mulf %69, %0 : vector<32x1xf32>
    %c0_40 = arith.constant 0 : index
    %c0_41 = arith.constant 0 : index
    %71 = vector.load %arg1[%c0_40, %c0_41] : memref<16x32xf32, #tpu.memory_space<vmem>>, vector<16x32xf32>
    %72 = vector.broadcast %70 : vector<32x1xf32> to vector<32x32xf32>
    %73 = arith.mulf %23, %72 : vector<32x32xf32>
    %cst_42 = arith.constant dense<0.000000e+00> : vector<16x32xf32>
    %74 = tpu.matmul %71, %73, %cst_42 {dimension_numbers = #tpu.dot_dimension_numbers<[1], [1], [0], [0], [0, 0, 1, 0], [], []>} : vector<16x32xf32>, vector<32x32xf32>, vector<16x32xf32> -> vector<16x32xf32>
    %75 = vector.extract_strided_slice %74 {offsets = [0, 0], sizes = [16, 16], strides = [1, 1]} : vector<16x32xf32> to vector<16x16xf32>
    %cst_43 = arith.constant dense<0xFF800000> : vector<16xf32>
    %76 = vector.multi_reduction <maximumf>, %75, %cst_43 [1] : vector<16x16xf32> to vector<16xf32>
    %77 = vector.shape_cast %76 : vector<16xf32> to vector<16x1xf32>
    %78 = vector.extract_strided_slice %74 {offsets = [0, 16], sizes = [16, 16], strides = [1, 1]} : vector<16x32xf32> to vector<16x16xf32>
    %cst_44 = arith.constant dense<0xFF800000> : vector<16xf32>
    %79 = vector.multi_reduction <maximumf>, %78, %cst_44 [1] : vector<16x16xf32> to vector<16xf32>
    %80 = vector.shape_cast %79 : vector<16xf32> to vector<16x1xf32>
    %81 = tpu.concatenate %77, %80 in 1 : vector<16x1xf32>, vector<16x1xf32> -> vector<16x2xf32>
    %c0_45 = arith.constant 0 : index
    %c0_46 = arith.constant 0 : index
    %82 = vector.load %arg2[%c0_45, %c0_46] : memref<2x16xf32, #tpu.memory_space<vmem>>, vector<2x16xf32>
    %cst_47 = arith.constant dense<0.000000e+00> : vector<2x2xf32>
    %83 = tpu.matmul %82, %81, %cst_47 {dimension_numbers = #tpu.dot_dimension_numbers<[1], [0], [0], [1], [0, 0, 1, 1], [], []>} : vector<2x16xf32>, vector<16x2xf32>, vector<2x2xf32> -> vector<2x2xf32>
    %c0_48 = arith.constant 0 : index
    %c0_49 = arith.constant 0 : index
    %84 = vector.load %arg16[%c0_48, %c0_49] : memref<2x2xf32, #tpu.memory_space<vmem>>, vector<2x2xf32>
    tpu.vector_store %arg16[%c0_48, %c0_49], %83 {strides = array<i32>} : memref<2x2xf32, #tpu.memory_space<vmem>>, vector<2x2xf32>,
    return
  }
  func.func @transform_0(%arg0: i32) -> (i32, i32) {
    %c0_i32 = arith.constant 0 : i32
    %c0_i32_0 = arith.constant 0 : i32
    %c0_i32_1 = arith.constant 0 : i32
    return %c0_i32, %c0_i32_0 : i32, i32
  }
  func.func @transform_1(%arg0: i32) -> (i32, i32) {
    %c0_i32 = arith.constant 0 : i32
    %c0_i32_0 = arith.constant 0 : i32
    %c0_i32_1 = arith.constant 0 : i32
    return %c0_i32, %c0_i32_0 : i32, i32
  }
  func.func @transform_2(%arg0: i32) -> (i32, i32) {
    %c0_i32 = arith.constant 0 : i32
    %c0_i32_0 = arith.constant 0 : i32
    return %arg0, %c0_i32 : i32, i32
  }
  func.func @transform_3(%arg0: i32) -> (i32, i32) {
    %c0_i32 = arith.constant 0 : i32
    %c0_i32_0 = arith.constant 0 : i32
    return %arg0, %c0_i32 : i32, i32
  }
  func.func @transform_4(%arg0: i32) -> (i32, i32) {
    %c0_i32 = arith.constant 0 : i32
    %c0_i32_0 = arith.constant 0 : i32
    return %arg0, %c0_i32 : i32, i32
  }
  func.func @transform_5(%arg0: i32) -> (i32, i32) {
    %c0_i32 = arith.constant 0 : i32
    %c0_i32_0 = arith.constant 0 : i32
    %c0_i32_1 = arith.constant 0 : i32
    return %c0_i32, %c0_i32_0 : i32, i32
  }
  func.func @transform_6(%arg0: i32) -> (i32, i32) {
    %c0_i32 = arith.constant 0 : i32
    %c0_i32_0 = arith.constant 0 : i32
    %c0_i32_1 = arith.constant 0 : i32
    return %c0_i32, %c0_i32_0 : i32, i32
  }
  func.func @transform_7(%arg0: i32) -> (i32, i32) {
    %c0_i32 = arith.constant 0 : i32
    %c0_i32_0 = arith.constant 0 : i32
    %c0_i32_1 = arith.constant 0 : i32
    return %c0_i32, %c0_i32_0 : i32, i32
  }
  func.func @transform_8(%arg0: i32) -> (i32, i32) {
    %c0_i32 = arith.constant 0 : i32
    %c0_i32_0 = arith.constant 0 : i32
    %c0_i32_1 = arith.constant 0 : i32
    return %c0_i32, %c0_i32_0 : i32, i32
  }
  func.func @transform_9(%arg0: i32) -> (i32, i32) {
    %c0_i32 = arith.constant 0 : i32
    %c0_i32_0 = arith.constant 0 : i32
    %c0_i32_1 = arith.constant 0 : i32
    return %c0_i32, %c0_i32_0 : i32, i32
  }
  func.func @transform_10(%arg0: i32) -> (i32, i32) {
    %c0_i32 = arith.constant 0 : i32
    %c0_i32_0 = arith.constant 0 : i32
    %c0_i32_1 = arith.constant 0 : i32
    return %c0_i32, %c0_i32_0 : i32, i32
  }
  func.func @transform_11(%arg0: i32) -> (i32, i32) {
    %c0_i32 = arith.constant 0 : i32
    %c0_i32_0 = arith.constant 0 : i32
    %c0_i32_1 = arith.constant 0 : i32
    return %c0_i32, %c0_i32_0 : i32, i32
  }
  func.func @transform_12(%arg0: i32) -> (i32, i32) {
    %c0_i32 = arith.constant 0 : i32
    %c0_i32_0 = arith.constant 0 : i32
    %c0_i32_1 = arith.constant 0 : i32
    return %c0_i32, %c0_i32_0 : i32, i32
  }
  func.func @transform_13(%arg0: i32) -> (i32, i32) {
    %c0_i32 = arith.constant 0 : i32
    %c0_i32_0 = arith.constant 0 : i32
    %c0_i32_1 = arith.constant 0 : i32
    return %c0_i32, %c0_i32_0 : i32, i32
  }
  func.func @transform_14(%arg0: i32) -> (i32, i32) {
    %c0_i32 = arith.constant 0 : i32
    %c0_i32_0 = arith.constant 0 : i32
    %c0_i32_1 = arith.constant 0 : i32
    return %c0_i32, %c0_i32_0 : i32, i32
  }
  func.func @transform_15(%arg0: i32) -> (i32, i32) {
    %c0_i32 = arith.constant 0 : i32
    %c0_i32_0 = arith.constant 0 : i32
    return %c0_i32, %arg0 : i32, i32
  }
}

</mosaic_0001>

<bundles_post_ra>
// kernel: colbert_kw_forward.2
= control target key start
LH: loop header
LB: loop body
LE: loop exit
PB: predicated region body
PF: predicated region fallthrough
CT: control target
= control target key end

     0   :  { %vm38_vm0 = vcmask 261120   ;;  %v309_v14 = vmov 0   ;;  %vm137_vm1 = vcmask 523264   ;;  %s411_s2 = inlined_call_operand.vmem [shape: f32[32,64], index: 2, kind: input, shape index: {}]   ;;  %s412_s0 = inlined_call_operand.vmem [shape: f32[16,32], index: 0, kind: input, shape index: {}]   ;;  %s413_s4 = inlined_call_operand.vmem [shape: f32[64,32], index: 4, kind: input, shape index: {}]   ;;  %s414_s1 = inlined_call_operand.vmem [shape: f32[16,1], index: 1, kind: input, shape index: {}]   ;;  %s415_s3 = inlined_call_operand.vmem [shape: f32[1,64], index: 3, kind: input, shape index: {}]   ;;  %s416_s5 = inlined_call_operand.vmem [shape: f32[1,32], index: 5, kind: input, shape index: {}]   ;;  %s417_s6 = inlined_call_operand.vmem [shape: f32[16,32], index: 6, kind: output, shape index: {}]  }
   0x1   :  { %v30_v0 = vld [vmem:[%s411_s2 + $0x18] sm:$0xff]  ;;  %v29_v1 = vld [vmem:[%s411_s2 + $0x10] sm:$0xff]  ;;  %v23_v2 = vld [vmem:[%s412_s0] sm:$0xff]  ;;  %304 = vset.pattern.permute.xlu0 %v309_v14 }
   0x2   :  { %273 = vmatprep.subr.mxu0 %v30_v0  ;;  %v28_v3 = vld [vmem:[%s411_s2 + $0x8] sm:$0xff]  ;;  %281 = vmatprep.mubr.msk.f32.mxu0 %vm38_vm0, %v23_v2  ;;  %v129_v4 = vld [vmem:[%s413_s4 + $0x38] sm:$0xff]  ;;  %v128_v5 = vld [vmem:[%s413_s4 + $0x30] sm:$0xff] }
   0x3   :  { %274 = vmatpush3.msra.mxu0 %v30_v0  ;;  %284 = vmatprep.subr.mxu1 %v129_v4  ;;  %v27_v6 = vld [vmem:[%s411_s2] sm:$0xff]  ;;  %v127_v7 = vld [vmem:[%s413_s4 + $0x28] sm:$0xff]  ;;  %v125_v10 = vld [vmem:[%s413_s4 + $0x18] sm:$0xff] }
   0x4   :  { %275 = vmatprep.subr.mxu0 %v29_v1  ;;  %285 = vmatpush3.msra.mxu1 %v129_v4  ;;  %v24_v8 = vld [vmem:[%s412_s0 + $0x8] sm:$0xff]  ;;  %v126_v9 = vld [vmem:[%s413_s4 + $0x20] sm:$0xff]  ;;  %v124_v11 = vld [vmem:[%s413_s4 + $0x10] sm:$0xff] }
   0x5   :  { %276 = vmatpush3.msra.mxu0 %v29_v1  ;;  %286 = vmatprep.subr.mxu1 %v128_v5  ;;  %v123_v12 = vld [vmem:[%s413_s4 + $0x8] sm:$0xff]  ;;  %v122_v13 = vld [vmem:[%s413_s4] sm:$0xff] }
   0x6   :  { %277 = vmatprep.subr.mxu0 %v28_v3  ;;  %287 = vmatpush3.msra.mxu1 %v128_v5  ;;  %v25_v15 = vld [vmem:[%s414_s1] sm:$0xff]  ;;  %v26_v16 = vld [vmem:[%s414_s1 + $0x8] sm:$0xff] }
   0x7   :  { %278 = vmatpush3.msra.mxu0 %v28_v3  ;;  %288 = vmatprep.subr.mxu1 %v127_v7  ;;  %v251_v17 = vld [vmem:[%s415_s3] ss:$0 sm:$0xff] }
   0x8   :  { %279 = vmatprep.subr.mxu0 %v27_v6  ;;  %289 = vmatpush3.msra.mxu1 %v127_v7  ;;  %v254_v25 = vld [vmem:[%s416_s5] ss:$0 sm:$0xff] }
   0x9   :  { %280 = vmatpush3.msra.mxu0 %v27_v6  ;;  %290 = vmatprep.subr.mxu1 %v126_v9 }
   0xa   :  { %282 = vmatmul.mubr.msk.f32.vlgmr.msra.gmra.mxu0 %vm38_vm0, %v24_v8  ;;  %291 = vmatpush3.msra.mxu1 %v126_v9 }
   0xb   :  { %292 = vmatprep.subr.mxu1 %v125_v10  ;;  %221 = vperm.xlu0 %304, %v25_v15  }
   0xc   :  { %293 = vmatpush3.msra.mxu1 %v125_v10 }
   0xd   :  { %294 = vmatprep.subr.mxu1 %v124_v11 }
   0xe   :  { %295 = vmatpush3.msra.mxu1 %v124_v11 }
   0xf   :  { %296 = vmatprep.subr.mxu1 %v123_v12  ;;  %226 = vperm.xlu0 %304, %v26_v16  }
  0x10   :  { %297 = vmatpush3.msra.mxu1 %v123_v12 }
  0x11   :  { %298 = vmatprep.subr.mxu1 %v122_v13 }
  0x12   :  { %299 = vmatpush3.msra.mxu1 %v122_v13 }
  0x86   :  { %v222_v24 = vpop.permute.xlu0 %221 }
  0x8a   :  { %v227_v28 = vpop.permute.xlu0 %226 }
  0xca   :  { %v283_v18 = vpop.f32.mrf.mxu0 }
  0xcb   :  { %v117_v19 = vadd.f32 %v283_v18, %v251_v17 }
  0xcc   :  { %v111_v20 = vpop.f32.mrf.mxu0 }
  0xcd   :  { %v112_v21 = vadd.f32 %v251_v17, %v111_v20  ;;  %v121_v23 = vmax.f32 %v117_v19, 0.0 }
  0xcf   :  { %v120_v22 = vmax.f32 %v112_v21, 0.0 }
  0xd1   :  { %300 = vmatprep.mubr.msk.f32.mxu1 %vm137_vm1, %v120_v22 }
  0xd2   :  { %301 = vmatmul.mubr.msk.f32.vlgmr.msra.gmra.mxu1 %vm137_vm1, %v121_v23 }
 0x192   :  { %v302_v26 = vpop.f32.mrf.mxu1 }
 0x193   :  { %v216_v27 = vadd.f32 %v302_v26, %v254_v25 }
 0x194   :  { %v210_v29 = vpop.f32.mrf.mxu1 }
 0x195   :  { %v211_v30 = vadd.f32 %v254_v25, %v210_v29  ;;  %v230_v31 = vmul.f32 %v227_v28, %v216_v27 }
 0x197   :  { %v229_v32 = vmul.f32 %v222_v24, %v211_v30  ;;  %v232_v35 = vmul.f32 %v230_v31, %v230_v31 }
 0x199   :  { %v231_v33 = vmul.f32 %v229_v32, %v229_v32  ;;  %v236_v36 = vsel %vm38_vm0, %v232_v35, 0.0 }
 0x19b   :  { %v233_v34 = vsel %vm38_vm0, %v231_v33, 0.0 }
 0x19c   :  { %234 = vadd.xlane.f32.xlu1 %v233_v34 }
 0x1a0   :  { %237 = vadd.xlane.f32.xlu1 %v236_v36 }
 0x225   :  { %v235_v37 = vpop.xlane.xlu1 %234 }
 0x226   :  { %v239_v38 = vmax.f32 %v235_v37, 1e-24 }
 0x228   :  { %305 = vrsqrt.f32 %v239_v38 }
 0x229   :  { %v238_v39 = vpop.xlane.xlu1 %237 }
 0x22a   :  { %v240_v40 = vmax.f32 %v238_v39, 1e-24 }
 0x22c   :  { %307 = vrsqrt.f32 %v240_v40 }
 0x235   :  { %v306_v41 = vpop.eup %305 }
 0x236   :  { %v243_v42 = vmul.f32 %v306_v41, %v229_v32 }
 0x238   :  { %245 = vst.msk [vmem:[%s417_s6] sm:$0xff] %vm38_vm0, %v243_v42 }
 0x239   :  { %v308_v43 = vpop.eup %307 }
 0x23a   :  { %v244_v44 = vmul.f32 %v308_v43, %v230_v31 }
 0x23c   :  { %246 = vst.msk [vmem:[%s417_s6 + $0x8] sm:$0xff] %vm38_vm0, %v244_v44 }

// kernel: colbert_kw_forward.3
= control target key start
LH: loop header
LB: loop body
LE: loop exit
PB: predicated region body
PF: predicated region fallthrough
CT: control target
= control target key end

     0   :  { %vm70_vm0 = vcmask 261120   ;;  %s1472_s0 = inlined_call_operand.vmem [shape: f32[16,32], index: 0, kind: input, shape index: {}]   ;;  %s1473_s1 = inlined_call_operand.vmem [shape: f32[2,16], index: 1, kind: input, shape index: {}]   ;;  %s1474_s2 = inlined_call_operand.vmem [shape: f32[32,32], index: 2, kind: input, shape index: {}]   ;;  %s1475_s3 = inlined_call_operand.vmem [shape: f32[32,32], index: 3, kind: input, shape index: {}]   ;;  %s1476_s4 = inlined_call_operand.vmem [shape: f32[32,1], index: 4, kind: input, shape index: {}]   ;;  %s1477_s5 = inlined_call_operand.vmem [shape: f32[32,64], index: 5, kind: input, shape index: {}]   ;;  %s1478_s6 = inlined_call_operand.vmem [shape: f32[1,64], index: 6, kind: input, shape index: {}]   ;;  %s1479_s7 = inlined_call_operand.vmem [shape: f32[64,32], index: 7, kind: input, shape index: {}]   ;;  %s1480_s8 = inlined_call_operand.vmem [shape: f32[1,32], index: 8, kind: input, shape index: {}]   ;;  %s1481_s9 = inlined_call_operand.vmem [shape: f32[32,64], index: 9, kind: input, shape index: {}]   ;;  %s1482_s10 = inlined_call_operand.vmem [shape: f32[1,64], index: 10, kind: input, shape index: {}]   ;;  %s1483_s11 = inlined_call_operand.vmem [shape: f32[1,64], index: 11, kind: input, shape index: {}]   ;;  %s1484_s12 = inlined_call_operand.vmem [shape: f32[1,64], index: 12, kind: input, shape index: {}]   ;;  %s1485_s13 = inlined_call_operand.vmem [shape: f32[64,64], index: 13, kind: input, shape index: {}]   ;;  %s1486_s14 = inlined_call_operand.vmem [shape: f32[1,64], index: 14, kind: input, shape index: {}]   ;;  %s1487_s15 = inlined_call_operand.hbm [shape: f32[2,2], index: 15, kind: output, shape index: {}]  }
   0x1   :  { %v62_v0 = vld [vmem:[%s1477_s5 + $0x18] sm:$0xff]  ;;  %v61_v1 = vld [vmem:[%s1477_s5 + $0x10] sm:$0xff]  ;;  %v55_v2 = vld [vmem:[%s1474_s2] sm:$0xff] }
   0x2   :  { %1004 = vmatprep.subr.mxu0 %v62_v0  ;;  %v60_v3 = vld [vmem:[%s1477_s5 + $0x8] sm:$0xff]  ;;  %1012 = vmatprep.mubr.msk.f32.mxu0 %vm70_vm0, %v55_v2  ;;  %v59_v4 = vld [vmem:[%s1477_s5] sm:$0xff]  ;;  %v179_v5 = vld [vmem:[%s1479_s7 + $0x38] sm:$0xff] }
   0x3   :  { %1005 = vmatpush3.msra.mxu0 %v62_v0  ;;  %v178_v6 = vld [vmem:[%s1479_s7 + $0x30] sm:$0xff]  ;;  %v56_v7 = vld [vmem:[%s1474_s2 + $0x8] sm:$0xff]  ;;  %v344_v8 = vld [vmem:[%s1481_s9 + $0x18] sm:$0xff]  ;;  %1018 = vmatprep.subr.mxu1 %v179_v5 }
   0x4   :  { %1006 = vmatprep.subr.mxu0 %v61_v1 }
   0x5   :  { %1007 = vmatpush3.msra.mxu0 %v61_v1 }
   0x6   :  { %1008 = vmatprep.subr.mxu0 %v60_v3 }
   0x7   :  { %1009 = vmatpush3.msra.mxu0 %v60_v3 }
   0x8   :  { %20 = vsyncpa [#allocation3], 0  ;;  %1010 = vmatprep.subr.mxu0 %v59_v4  ;;  %v57_v9 = vld [vmem:[%s1474_s2 + $0x10] sm:$0xff]  ;;  %1019 = vmatpush3.msra.mxu1 %v179_v5  ;;  %v177_v11 = vld [vmem:[%s1479_s7 + $0x28] sm:$0xff]  ;;  %v1154_v24 = vmov 0   ;;  %vm187_vm1 = vcmask 523264  }
   0x9   :  { %1011 = vmatpush3.msra.mxu0 %v59_v4  ;;  %v343_v10 = vld [vmem:[%s1481_s9 + $0x10] sm:$0xff]  ;;  %1020 = vmatprep.subr.mxu1 %v178_v6  ;;  %v58_v12 = vld [vmem:[%s1474_s2 + $0x18] sm:$0xff]  ;;  %v342_v13 = vld [vmem:[%s1481_s9 + $0x8] sm:$0xff]  ;;  %vm822_vm2 = vcmask 261248   ;;  %vm815_vm3 = vcmask 130048   ;;  %vm1156_vm4 = vmmov 0  }
   0xa   :  { %1013 = vmatmul.mubr.msk.f32.vlgmr.msra.gmra.mxu0 %vm70_vm0, %v56_v7  ;;  %1040 = vmatprep.subr.mxu0 %v344_v8  ;;  %v337_v14 = vld [vmem:[%s1475_s3] sm:$0xff]  ;;  %v338_v17 = vld [vmem:[%s1475_s3 + $0x8] sm:$0xff]  ;;  %v339_v18 = vld [vmem:[%s1475_s3 + $0x10] sm:$0xff]  ;;  %vm829_vm5 = vcmask 7168   ;;  %s1157_s23 = smov [#allocation2]   ;;  %vm906_vm6 = vcmask 9216  }
   0xb   :  { %1041 = vmatpush3.msra.mxu0 %v344_v8  ;;  %1015 = vmatprep.mubr.msk.f32.mxu0 %vm70_vm0, %v57_v9  ;;  %v341_v15 = vld [vmem:[%s1481_s9] sm:$0xff]  ;;  %v340_v19 = vld [vmem:[%s1475_s3 + $0x18] sm:$0xff]  ;;  %v174_v21 = vld [vmem:[%s1479_s7 + $0x10] sm:$0xff]  ;;  %s914_s24 = sshll.u32 %s1157_s23, 4  ;;  %s915_s24 = int_to_ptr.vmem [resolvable:$true] %s914_s24 }
   0xc   :  { %1042 = vmatprep.subr.mxu0 %v343_v10  ;;  %1021 = vmatpush3.msra.mxu1 %v178_v6  ;;  %v176_v16 = vld [vmem:[%s1479_s7 + $0x20] sm:$0xff]  ;;  %v175_v20 = vld [vmem:[%s1479_s7 + $0x18] sm:$0xff]  ;;  %v173_v22 = vld [vmem:[%s1479_s7 + $0x8] sm:$0xff]  ;;  %s1132_s25 = scalar_lea.vmem %s915_s24, 32  ;;  %p1137_p1 = scmp.lt.s32.totalorder %s915_s24, %s915_s24 }
   0xd   :  { %1043 = vmatpush3.msra.mxu0 %v343_v10  ;;  %1022 = vmatprep.subr.mxu1 %v177_v11  ;;  %v172_v23 = vld [vmem:[%s1479_s7] sm:$0xff]  ;;  %v543_v63 = vld [vmem:[%s1485_s13 + $0x38] sm:$0xff]  ;;  %v542_v1 = vld [vmem:[%s1485_s13 + $0x30] sm:$0xff]  ;;  %p1133_p0 = scmp.ne.s32.totalorder %s915_s24, %s1132_s25  ;;  %p1138_p2 = scmp.lt.s32.totalorder %s1132_s25, %s1132_s25 }
   0xe   :  { %1016 = vmatmul.mubr.msk.f32.gmra.mxu0 %vm70_vm0, %v58_v12  ;;  %1044 = vmatprep.subr.mxu0 %v342_v13  ;;  %v922_v25 = vld [vmem:[%s1478_s6] ss:$0 sm:$0xff]  ;;  %v1362_v0 = vld [vmem:[%s1476_s4 + $0x18] sm:$0xff]  ;;  %v541_v2 = vld [vmem:[%s1485_s13 + $0x28] sm:$0xff] }
   0xf   :  { %1045 = vmatpush3.msra.mxu0 %v342_v13  ;;  %1048 = vmatprep.mubr.msk.f32.mxu0 %vm70_vm0, %v337_v14  ;;  %v932_v35 = vld [vmem:[%s1482_s10] ss:$0 sm:$0xff]  ;;  %v1374_v3 = vld [vmem:[%s1476_s4 + $0x8] sm:$0xff]  ;;  %v539_v5 = vld [vmem:[%s1485_s13 + $0x18] sm:$0xff]  ;;  %p1139_p3 = por %p1138_p2, %p1137_p1 }
  0x10   :  { %1046 = vmatprep.subr.mxu0 %v341_v15  ;;  %1023 = vmatpush3.msra.mxu1 %v177_v11  ;;  %v540_v4 = vld [vmem:[%s1485_s13 + $0x20] sm:$0xff]  ;;  %v538_v6 = vld [vmem:[%s1485_s13 + $0x10] sm:$0xff]  ;;  %v537_v7 = vld [vmem:[%s1485_s13 + $0x8] sm:$0xff] }
  0x11   :  { %1047 = vmatpush3.msra.mxu0 %v341_v15  ;;  %1024 = vmatprep.subr.mxu1 %v176_v16  ;;  %v536_v8 = vld [vmem:[%s1485_s13] sm:$0xff]  ;;  %p1140_p4 = pnand %p1139_p3, %p1133_p0 }
  0x12   :  { %1049 = vmatmul.mubr.msk.f32.vlgmr.msra.gmra.mxu0 %vm70_vm0, %v338_v17  ;;  %1025 = vmatpush3.msra.mxu1 %v176_v16 }
  0x13   :  { %1051 = vmatprep.mubr.msk.f32.mxu0 %vm70_vm0, %v339_v18  ;;  %1026 = vmatprep.subr.mxu1 %v175_v20 }
  0x14   :  { %1027 = vmatpush3.msra.mxu1 %v175_v20  ;;  %1098 = vset.pattern.permute.xlu1 %v1154_v24 }
  0x15   :  { %1028 = vmatprep.subr.mxu1 %v174_v21  ;;  %1099 = vset.pattern.permute.xlu0 %v1154_v24 }
  0x16   :  { %1052 = vmatmul.mubr.msk.f32.gmra.mxu0 %vm70_vm0, %v340_v19  ;;  %1029 = vmatpush3.msra.mxu1 %v174_v21 }
  0x17   :  { %1030 = vmatprep.subr.mxu1 %v173_v22  ;;  %1054 = vmatprep.subr.mxu0 %v543_v63 }
  0x18   :  { %1031 = vmatpush3.msra.mxu1 %v173_v22  ;;  %1055 = vmatpush3.msra.mxu0 %v543_v63 }
  0x19   :  { %1032 = vmatprep.subr.mxu1 %v172_v23  ;;  %1056 = vmatprep.subr.mxu0 %v542_v1 }
  0x1a   :  { %1033 = vmatpush3.msra.mxu1 %v172_v23  ;;  %1057 = vmatpush3.msra.mxu0 %v542_v1  ;;  %v943_v1 = vld [vmem:[%s1486_s14] ss:$0 sm:$0xff] }
  0x1b   :  { %1058 = vmatprep.subr.mxu0 %v541_v2 }
  0x1c   :  { %1059 = vmatpush3.msra.mxu0 %v541_v2 }
  0x1d   :  { %1060 = vmatprep.subr.mxu0 %v540_v4 }
  0x1e   :  { %1061 = vmatpush3.msra.mxu0 %v540_v4 }
  0x1f   :  { %1062 = vmatprep.subr.mxu0 %v539_v5 }
  0x20   :  { %1063 = vmatpush3.msra.mxu0 %v539_v5 }
  0x21   :  { %1064 = vmatprep.subr.mxu0 %v538_v6 }
  0x22   :  { %1065 = vmatpush3.msra.mxu0 %v538_v6 }
  0x23   :  { %1066 = vmatprep.subr.mxu0 %v537_v7 }
  0x24   :  { %1067 = vmatpush3.msra.mxu0 %v537_v7 }
  0x25   :  { %1068 = vmatprep.subr.mxu0 %v536_v8 }
  0x26   :  { %1069 = vmatpush3.msra.mxu0 %v536_v8 }
  0xca   :  { %v1014_v26 = vpop.f32.mrf.mxu0 }
  0xcb   :  { %v155_v27 = vadd.f32 %v1014_v26, %v922_v25 }
  0xcc   :  { %v149_v28 = vpop.f32.mrf.mxu0 }
  0xcd   :  { %v150_v29 = vadd.f32 %v922_v25, %v149_v28  ;;  %v169_v32 = vmax.f32 %v155_v27, 0.0 }
  0xce   :  { %v1017_v30 = vpop.f32.mrf.mxu0 }
  0xcf   :  { %v168_v31 = vmax.f32 %v150_v29, 0.0  ;;  %v165_v33 = vadd.f32 %v1017_v30, %v922_v25 }
  0xd0   :  { %v159_v34 = vpop.f32.mrf.mxu0 }
  0xd1   :  { %v160_v36 = vadd.f32 %v922_v25, %v159_v34  ;;  %1034 = vmatprep.mubr.msk.f32.mxu1 %vm187_vm1, %v168_v31  ;;  %v171_v40 = vmax.f32 %v165_v33, 0.0 }
  0xd2   :  { %1035 = vmatmul.mubr.msk.f32.vlgmr.msra.gmra.mxu1 %vm187_vm1, %v169_v32  ;;  %v1050_v37 = vpop.f32.mrf.mxu0 }
  0xd3   :  { %v170_v38 = vmax.f32 %v160_v36, 0.0  ;;  %v436_v39 = vadd.f32 %v1050_v37, %v932_v35 }
  0xd4   :  { %v430_v41 = vpop.f32.mrf.mxu0 }
  0xd5   :  { %v1326_v42 = vmax.f32 %v436_v39, 0.0  ;;  %v431_v43 = vadd.f32 %v932_v35, %v430_v41  ;;  %1037 = vmatprep.mubr.msk.f32.mxu1 %vm187_vm1, %v170_v38  ;;  %v937_v41 = vld [vmem:[%s1483_s11] ss:$0 sm:$0xff] }
  0xd6   :  { %1038 = vmatmul.mubr.msk.f32.gmra.mxu1 %vm187_vm1, %v171_v40  ;;  %v1053_v44 = vpop.f32.mrf.mxu0 }
  0xd7   :  { %v1330_v45 = vmax.f32 %v431_v43, 0.0  ;;  %v456_v46 = vsel %vm187_vm1, %v1326_v42, 0.0  ;;  %v471_v47 = vmul.f32 %v1326_v42, %v1326_v42  ;;  %v446_v49 = vadd.f32 %v1053_v44, %v932_v35 }
  0xd8   :  { %457 = vadd.xlane.f32.xlu0 %v456_v46  ;;  %v440_v48 = vpop.f32.mrf.mxu0 }
  0xd9   :  { %v477_v50 = vsel %vm187_vm1, %v471_v47, 0.0  ;;  %v441_v51 = vadd.f32 %v932_v35, %v440_v48  ;;  %v470_v52 = vmul.f32 %v1330_v45, %v1330_v45  ;;  %v453_v54 = vsel %vm187_vm1, %v1330_v45, 0.0  ;;  %v938_v48 = vld [vmem:[%s1484_s12] ss:$0 sm:$0xff] }
  0xda   :  { %478 = vadd.xlane.f32.xlu1 %v477_v50  ;;  %v1343_v55 = vmax.f32 %v446_v49, 0.0 }
  0xdb   :  { %v1339_v53 = vmax.f32 %v441_v51, 0.0  ;;  %v474_v56 = vsel %vm187_vm1, %v470_v52, 0.0 }
  0xdc   :  { %454 = vadd.xlane.f32.xlu0 %v453_v54  ;;  %v462_v59 = vsel %vm187_vm1, %v1343_v55, 0.0  ;;  %v473_v60 = vmul.f32 %v1343_v55, %v1343_v55 }
  0xdd   :  { %v459_v57 = vsel %vm187_vm1, %v1339_v53, 0.0  ;;  %v472_v58 = vmul.f32 %v1339_v53, %v1339_v53 }
  0xde   :  { %475 = vadd.xlane.f32.xlu1 %v474_v56  ;;  %v483_v62 = vsel %vm187_vm1, %v473_v60, 0.0 }
  0xdf   :  { %v480_v61 = vsel %vm187_vm1, %v472_v58, 0.0 }
  0xe0   :  { %460 = vadd.xlane.f32.xlu0 %v459_v57 }
  0xe2   :  { %463 = vadd.xlane.f32.xlu1 %v462_v59 }
  0xe4   :  { %481 = vadd.xlane.f32.xlu0 %v480_v61 }
  0xe6   :  { %484 = vadd.xlane.f32.xlu1 %v483_v62 }
  0xf7   :  { %302 = vperm.xlu1 %1098, %v1362_v0  }
  0xfb   :  { %292 = vperm.xlu1 %1098, %v1374_v3  }
 0x161   :  { %v458_v9 = vpop.xlane.xlu0 %457 }
 0x162   :  { %v467_v10 = vmul.f32 0.015625, %v458_v9 }
 0x163   :  { %v479_v11 = vpop.xlane.xlu1 %478 }
 0x164   :  { %v491_v12 = vmul.f32 %v467_v10, %v467_v10  ;;  %v487_v13 = vmul.f32 0.015625, %v479_v11  ;;  %v499_v38 = vsub.f32 %v1326_v42, %v467_v10 }
 0x165   :  { %v455_v14 = vpop.xlane.xlu0 %454 }
 0x166   :  { %v495_v15 = vsub.f32 %v487_v13, %v491_v12  ;;  %v466_v16 = vmul.f32 0.015625, %v455_v14 }
 0x167   :  { %v476_v17 = vpop.xlane.xlu1 %475 }
 0x168   :  { %v503_v18 = vadd.f32 1e-05, %v495_v15  ;;  %v490_v19 = vmul.f32 %v466_v16, %v466_v16  ;;  %v486_v20 = vmul.f32 0.015625, %v476_v17  ;;  %v498_v40 = vsub.f32 %v1330_v45, %v466_v16 }
 0x169   :  { %v461_v21 = vpop.xlane.xlu0 %460 }
 0x16a   :  { %1100 = vrsqrt.f32 %v503_v18  ;;  %v494_v22 = vsub.f32 %v486_v20, %v490_v19  ;;  %v468_v23 = vmul.f32 0.015625, %v461_v21  ;;  %v1419_v18 = vld [vmem:[%s1476_s4] sm:$0xff]  ;;  %v53_v19 = vld [vmem:[%s1476_s4 + $0x10] sm:$0xff] }
 0x16b   :  { %v464_v24 = vpop.xlane.xlu1 %463 }
 0x16c   :  { %v502_v25 = vadd.f32 1e-05, %v494_v22  ;;  %v469_v26 = vmul.f32 0.015625, %v464_v24  ;;  %v492_v28 = vmul.f32 %v468_v23, %v468_v23  ;;  %v500_v49 = vsub.f32 %v1339_v53, %v468_v23 }
 0x16d   :  { %v482_v27 = vpop.xlane.xlu0 %481 }
 0x16e   :  { %1102 = vrsqrt.f32 %v502_v25  ;;  %v488_v29 = vmul.f32 0.015625, %v482_v27  ;;  %v493_v31 = vmul.f32 %v469_v26, %v469_v26  ;;  %v501_v52 = vsub.f32 %v1343_v55, %v469_v26  ;;  %v927_v55 = vld [vmem:[%s1480_s8] ss:$0 sm:$0xff] }
 0x16f   :  { %v485_v30 = vpop.xlane.xlu1 %484 }
 0x170   :  { %v496_v32 = vsub.f32 %v488_v29, %v492_v28  ;;  %v489_v33 = vmul.f32 0.015625, %v485_v30 }
 0x172   :  { %v504_v34 = vadd.f32 1e-05, %v496_v32  ;;  %v497_v35 = vsub.f32 %v489_v33, %v493_v31 }
 0x173   :  { %v303_v21 = vpop.permute.xlu1 %302 }
 0x174   :  { %1104 = vrsqrt.f32 %v504_v34  ;;  %v505_v36 = vadd.f32 1e-05, %v497_v35 }
 0x176   :  { %1106 = vrsqrt.f32 %v505_v36 }
 0x177   :  { %v1101_v37 = vpop.eup %1100  ;;  %v293_v25 = vpop.permute.xlu1 %292 }
 0x178   :  { %v511_v39 = vmul.f32 %v1101_v37, %v499_v38 }
 0x17a   :  { %v522_v46 = vmul.f32 %v937_v41, %v511_v39 }
 0x17b   :  { %v1103_v43 = vpop.eup %1102 }
 0x17c   :  { %v510_v44 = vmul.f32 %v1103_v43, %v498_v40  ;;  %v533_v42 = vadd.f32 %v938_v48, %v522_v46 }
 0x17e   :  { %v521_v47 = vmul.f32 %v937_v41, %v510_v44 }
 0x180   :  { %v532_v50 = vadd.f32 %v938_v48, %v521_v47 }
 0x181   :  { %v1105_v51 = vpop.eup %1104 }
 0x182   :  { %1070 = vmatprep.mubr.msk.f32.mxu0 %vm187_vm1, %v532_v50  ;;  %v512_v45 = vmul.f32 %v1105_v51, %v500_v49 }
 0x183   :  { %v1107_v54 = vpop.eup %1106  ;;  %1071 = vmatmul.mubr.msk.f32.vlgmr.msra.gmra.mxu0 %vm187_vm1, %v533_v42 }
 0x184   :  { %v523_v56 = vmul.f32 %v937_v41, %v512_v45  ;;  %v513_v57 = vmul.f32 %v1107_v54, %v501_v52 }
 0x186   :  { %v534_v58 = vadd.f32 %v938_v48, %v523_v56  ;;  %v524_v59 = vmul.f32 %v937_v41, %v513_v57 }
 0x188   :  { %1073 = vmatprep.mubr.msk.f32.mxu0 %vm187_vm1, %v534_v58  ;;  %v535_v60 = vadd.f32 %v938_v48, %v524_v59 }
 0x18a   :  { %1074 = vmatmul.mubr.msk.f32.gmra.mxu0 %vm187_vm1, %v535_v60 }
 0x192   :  { %v1036_v53 = vpop.f32.mrf.mxu1 }
 0x193   :  { %v272_v23 = vadd.f32 %v1036_v53, %v927_v55 }
 0x194   :  { %v266_v61 = vpop.f32.mrf.mxu1 }
 0x195   :  { %v267_v62 = vadd.f32 %v927_v55, %v266_v61  ;;  %v1427_v26 = vmul.f32 %v293_v25, %v272_v23 }
 0x196   :  { %v1039_v20 = vpop.f32.mrf.mxu1 }
 0x197   :  { %v282_v22 = vadd.f32 %v1039_v20, %v927_v55  ;;  %v310_v29 = vmul.f32 %v1427_v26, %v1427_v26 }
 0x198   :  { %v276_v39 = vpop.f32.mrf.mxu1 }
 0x199   :  { %v1425_v24 = vmul.f32 %v303_v21, %v282_v22  ;;  %v316_v30 = vsel %vm70_vm0, %v310_v29, 0.0  ;;  %v277_v43 = vadd.f32 %v927_v55, %v276_v39  ;;  %v832_v39 = vld [vmem:[%s1473_s1] sm:$0x3] }
 0x19b   :  { %v312_v27 = vmul.f32 %v1425_v24, %v1425_v24 }
 0x19d   :  { %v322_v28 = vsel %vm70_vm0, %v312_v27, 0.0 }
 0x243   :  { %v1072_v63 = vpop.f32.mrf.mxu0 }
 0x244   :  { %v642_v2 = vmax.f32 %v1072_v63, 0.0 }
 0x245   :  { %v622_v4 = vpop.f32.mrf.mxu0 }
 0x246   :  { %v641_v5 = vmax.f32 %v622_v4, 0.0  ;;  %v653_v6 = vmul.f32 %v943_v1, %v642_v2  ;;  %v696_v2 = vld [vmem:[%s1472_s0] sm:$0xff] }
 0x247   :  { %1084 = vmatprep.mubr.msk.f32.mxu1 %vm70_vm0, %v696_v2 }
 0x248   :  { %v659_v7 = vsel %vm187_vm1, %v653_v6, 0.0  ;;  %v652_v8 = vmul.f32 %v943_v1, %v641_v5 }
 0x249   :  { %660 = vadd.xlane.f32.xlu0 %v659_v7 }
 0x24a   :  { %v1075_v9 = vpop.f32.mrf.mxu0  ;;  %v656_v12 = vsel %vm187_vm1, %v652_v8, 0.0 }
 0x24b   :  { %v644_v10 = vmax.f32 %v1075_v9, 0.0 }
 0x24c   :  { %v632_v11 = vpop.f32.mrf.mxu0 }
 0x24d   :  { %v643_v13 = vmax.f32 %v632_v11, 0.0  ;;  %657 = vadd.xlane.f32.xlu0 %v656_v12  ;;  %v655_v14 = vmul.f32 %v943_v1, %v644_v10 }
 0x24f   :  { %v654_v15 = vmul.f32 %v943_v1, %v643_v13  ;;  %v665_v16 = vsel %vm187_vm1, %v655_v14, 0.0 }
 0x251   :  { %666 = vadd.xlane.f32.xlu0 %v665_v16  ;;  %v662_v17 = vsel %vm187_vm1, %v654_v15, 0.0 }
 0x252   :  { %663 = vadd.xlane.f32.xlu1 %v662_v17 }
 0x263   :  { %287 = vperm.xlu1 %1098, %v1419_v18  }
 0x267   :  { %297 = vperm.xlu0 %1099, %v53_v19  }
 0x287   :  { %323 = vadd.xlane.f32.xlu1 %v322_v28 }
 0x28b   :  { %317 = vadd.xlane.f32.xlu1 %v316_v30 }
 0x2d2   :  { %v661_v31 = vpop.xlane.xlu0 %660 }
 0x2d3   :  { %v945_v33 = vmul.f32 -1.442695, %v661_v31 }
 0x2d5   :  { %1108 = vpow2.f32 %v945_v33  ;;  %v1155_v33 = vmov 0.0  }
 0x2d6   :  { %v658_v32 = vpop.xlane.xlu0 %657 }
 0x2d7   :  { %v944_v35 = vmul.f32 -1.442695, %v658_v32 }
 0x2da   :  { %v667_v34 = vpop.xlane.xlu0 %666 }
 0x2db   :  { %v947_v36 = vmul.f32 -1.442695, %v667_v34  ;;  %v664_v37 = vpop.xlane.xlu1 %663 }
 0x2dc   :  { %v946_v38 = vmul.f32 -1.442695, %v664_v37 }
 0x2dd   :  { %1110 = vpow2.f32 %v947_v36 }
 0x2de   :  { %1112 = vpow2.f32 %v946_v38 }
 0x2df   :  { %1114 = vpow2.f32 %v944_v35  ;;  %v288_v40 = vpop.permute.xlu1 %287 }
 0x2e0   :  { %v1435_v41 = vmul.f32 %v288_v40, %v267_v62 }
 0x2e2   :  { %v298_v44 = vpop.permute.xlu0 %297  ;;  %v309_v46 = vmul.f32 %v1435_v41, %v1435_v41  ;;  %v1109_v51 = vpop.eup %1108 }
 0x2e3   :  { %v307_v47 = vmul.f32 %v298_v44, %v277_v43  ;;  %v681_v45 = vadd.f32 1.0, %v1109_v51 }
 0x2e4   :  { %v313_v48 = vsel %vm70_vm0, %v309_v46, 0.0 }
 0x2e5   :  { %314 = vadd.xlane.f32.xlu1 %v313_v48  ;;  %v311_v49 = vmul.f32 %v307_v47, %v307_v47 }
 0x2e7   :  { %v319_v50 = vsel %vm70_vm0, %v311_v49, 0.0 }
 0x2e8   :  { %320 = vadd.xlane.f32.xlu0 %v319_v50 }
 0x2ea   :  { %v1111_v42 = vpop.eup %1110 }
 0x2eb   :  { %v1113_v52 = vpop.eup %1112  ;;  %v683_v54 = vadd.f32 1.0, %v1111_v42 }
 0x2ec   :  { %v1115_v56 = vpop.eup %1114  ;;  %v682_v57 = vadd.f32 1.0, %v1113_v52 }
 0x2ed   :  { %1116 = vrcp.f32 %v683_v54  ;;  %v680_v58 = vadd.f32 1.0, %v1115_v56 }
 0x2ee   :  { %1118 = vrcp.f32 %v682_v57 }
 0x2ef   :  { %1120 = vrcp.f32 %v681_v45 }
 0x2f0   :  { %1122 = vrcp.f32 %v680_v58 }
 0x2fa   :  { %v1117_v59 = vpop.eup %1116 }
 0x2fb   :  { %v1119_v60 = vpop.eup %1118  ;;  %v695_v53 = vmul.f32 %v1117_v59, %v1362_v0 }
 0x2fc   :  { %v1121_v55 = vpop.eup %1120  ;;  %v694_v61 = vmul.f32 %v1119_v60, %v53_v19 }
 0x2fd   :  { %715 = vperm.xlu1 %1098, %v695_v53   ;;  %v693_v62 = vmul.f32 %v1121_v55, %v1374_v3  ;;  %v1123_v63 = vpop.eup %1122 }
 0x2fe   :  { %710 = vperm.xlu0 %1099, %v694_v61   ;;  %v692_v1 = vmul.f32 %v1123_v63, %v1419_v18 }
 0x301   :  { %705 = vperm.xlu1 %1098, %v693_v62  }
 0x305   :  { %700 = vperm.xlu1 %1098, %v692_v1  }
 0x310   :  { %v324_v4 = vpop.xlane.xlu1 %323 }
 0x311   :  { %v328_v5 = vmax.f32 %v324_v4, 1e-24 }
 0x313   :  { %1124 = vrsqrt.f32 %v328_v5 }
 0x314   :  { %v318_v0 = vpop.xlane.xlu1 %317 }
 0x315   :  { %v326_v6 = vmax.f32 %v318_v0, 1e-24 }
 0x317   :  { %1126 = vrsqrt.f32 %v326_v6 }
 0x320   :  { %v1125_v10 = vpop.eup %1124 }
 0x321   :  { %v336_v11 = vmul.f32 %v1125_v10, %v1425_v24 }
 0x324   :  { %v1127_v14 = vpop.eup %1126 }
 0x325   :  { %v334_v21 = vmul.f32 %v1127_v14, %v1427_v26  ;;  %v697_v26 = vld [vmem:[%s1472_s0 + $0x8] sm:$0xff] }
 0x36e   :  { %v315_v7 = vpop.xlane.xlu1 %314 }
 0x36f   :  { %v325_v9 = vmax.f32 %v315_v7, 1e-24 }
 0x371   :  { %v321_v8 = vpop.xlane.xlu0 %320 }
 0x372   :  { %v327_v3 = vmax.f32 %v321_v8, 1e-24 }
 0x374   :  { %1128 = vrsqrt.f32 %v327_v3 }
 0x375   :  { %1130 = vrsqrt.f32 %v325_v9 }
 0x378   :  { %v716_v12 = vpop.permute.xlu1 %715 }
 0x379   :  { %v721_v13 = vmul.f32 %v716_v12, %v336_v11  ;;  %v711_v19 = vpop.permute.xlu0 %710 }
 0x37b   :  { %1076 = vmatprep.subr.msk.mxu1 %vm70_vm0, %v721_v13 }
 0x37c   :  { %1077 = vmatpush3.xpose.msk.msra.mxu1 %vm70_vm0, %v721_v13  ;;  %v706_v16 = vpop.permute.xlu1 %705 }
 0x37d   :  { %v719_v22 = vmul.f32 %v706_v16, %v334_v21 }
 0x380   :  { %v701_v24 = vpop.permute.xlu1 %700 }
 0x381   :  { %v1129_v15 = vpop.eup %1128 }
 0x382   :  { %v335_v17 = vmul.f32 %v1129_v15, %v307_v47  ;;  %v1131_v18 = vpop.eup %1130 }
 0x383   :  { %v333_v23 = vmul.f32 %v1131_v18, %v1435_v41 }
 0x384   :  { %v720_v20 = vmul.f32 %v711_v19, %v335_v17 }
 0x385   :  { %v718_v25 = vmul.f32 %v701_v24, %v333_v23 }
 0x386   :  { %1078 = vmatprep.subr.msk.mxu1 %vm70_vm0, %v720_v20 }
 0x387   :  { %1079 = vmatpush3.xpose.msk.msra.mxu1 %vm70_vm0, %v720_v20 }
 0x388   :  { %1080 = vmatprep.subr.msk.mxu1 %vm70_vm0, %v719_v22 }
 0x38b   :  { %1081 = vmatpush3.xpose.msk.msra.mxu1 %vm70_vm0, %v719_v22 }
 0x38c   :  { %1082 = vmatprep.subr.msk.mxu1 %vm70_vm0, %v718_v25 }
 0x38f   :  { %1083 = vmatpush3.xpose.msk.msra.mxu1 %vm70_vm0, %v718_v25 }
 0x390   :  { %1087 = vmatprep.subr.mxu1 %v1155_v33 }
 0x392   :  { %1085 = vmatmul.mubr.msk.f32.vlgmr.msra.gmra.mxu1 %vm70_vm0, %v697_v26 }
 0x393   :  { %1091 = vmatprep.mubr.msk.f32.mxu1 %vm1156_vm4, %v1155_v33 }
 0x452   :  { %v1086_v27 = vpop.f32.mrf.mxu1 }
 0x453   :  { %v826_v28 = vsel %vm822_vm2, %v1086_v27, -inf  ;;  %v819_v29 = vsel %vm815_vm3, %v1086_v27, -inf }
 0x454   :  { %827 = vmax.xlane.f32.xlu0 %v826_v28  ;;  %820 = vmax.xlane.f32.xlu1 %v819_v29  ;;  %v806_v30 = vpop.f32.mrf.mxu1 }
 0x455   :  { %v816_v31 = vsel %vm815_vm3, %v806_v30, -inf  ;;  %v823_v32 = vsel %vm822_vm2, %v806_v30, -inf }
 0x458   :  { %817 = vmax.xlane.f32.xlu1 %v816_v31 }
 0x45c   :  { %824 = vmax.xlane.f32.xlu1 %v823_v32 }
 0x4dd   :  { %v828_v34 = vpop.xlane.xlu0 %827  ;;  %v821_v35 = vpop.xlane.xlu1 %820 }
 0x4de   :  { %v831_v36 = vsel %vm829_vm5, %v821_v35, %v828_v34 }
 0x4df   :  { %1088 = vmatpush3.msra.mxu1 %v831_v36 }
 0x4e0   :  { %1089 = vmatprep.subr.mxu1 %v1155_v33 }
 0x4e1   :  { %v818_v37 = vpop.xlane.xlu1 %817 }
 0x4e5   :  { %v825_v38 = vpop.xlane.xlu1 %824 }
 0x4e6   :  { %v830_v40 = vsel %vm829_vm5, %v818_v37, %v825_v38 }
 0x4e7   :  { %1090 = vmatpush3.msra.mxu1 %v830_v40 }
 0x4e8   :  { %1092 = vmatmul.mubr.msk.f32.vlgmr.msra.gmra.mxu1 %vm815_vm3, %v832_v39 }
 0x5a8   :  { %v902_v41 = vpop.f32.mrf.mxu1 }
 0x5a9   :  { %907 = vst.msk [vmem:[#allocation2] sm:$0x3] %vm906_vm6, %v902_v41 }
 0x5aa   :  { %v1093_v43 = vpop.f32.mrf.mxu1 }
 0x5ab   :  { %1143 = shalt.err (!%p1140_p4)
}
 0x5ac   :  { %917 = dma.vmem_to_hbm [thread:$0]  %s915_s24, 32, %s1487_s15, [#allocation3]  }
 0x5ad   :  { %1152 = dma.done.wait [#allocation3], 32  }
 0x5ae   :  { %1153 = vsyncadd [#allocation3], 4294967264 }
 0x5af   :  { %921 = vsyncpa [#allocation3], 1 }

</bundles_post_ra>
